<compile_context>
chip_gen: v5e
topology: v5e:2x2
jax: 0.10.0
libtpu: 0.0.40
codegen_flags: <defaults>
</compile_context>

<pallas_src>
import jax
import jax.numpy as jnp
from jax.experimental import pallas as pl
from jax.experimental.pallas import tpu as pltpu

_LANE = 128      # lane width (last dim)
_SUBLANE = 8     # sublane width (second-to-last dim)


def _round_up(x, m):
    return (x + m - 1) // m * m


def gine_layer_kernel(xg_ref, xs_ref, src_ref, dst_ref, ea_ref,
                      we_ref, be_ref, w_ref, b_ref, o_ref, acc_ref):
    """One GINEConv layer + ReLU at one (node-tile i, edge-tile k) grid point."""
    i = pl.program_id(0)                 # node tile (parallel)
    k = pl.program_id(1)                 # edge tile (reduction, "arbitrary")
    n_k = pl.num_programs(1)

    tn, _ = acc_ref.shape
    te = src_ref.shape[0]
    n_pad = xg_ref.shape[0]

    @pl.when(k == 0)
    def _init():
        acc_ref[...] = jnp.zeros_like(acc_ref)

    # Edge embedding: Linear(edge_dim=1 -> D) == outer-product broadcast. [TE, Dp]
    edge_emb = ea_ref[...] * we_ref[...] + be_ref[...]

    # Gather x[src] via one-hot matmul (bf16 operands, f32 accumulation).
    gather = (jax.lax.broadcasted_iota(jnp.int32, (te, n_pad), 1)
              == src_ref[...]).astype(jnp.bfloat16)               # [TE, Np] bf16
    x_src = jnp.dot(gather, xg_ref[...],
                    preferred_element_type=jnp.float32)           # [TE, Dp] f32

    # Message + ReLU.
    msg = jnp.maximum(x_src + edge_emb, 0.0)                      # [TE, Dp] f32

    # Scatter-sum into this node tile: output rows [i*TN, (i+1)*TN).
    row_ids = jax.lax.broadcasted_iota(jnp.int32, (tn, te), 0) + i * tn
    scatter = (row_ids == dst_ref[...]).astype(jnp.bfloat16)      # [TN, TE] bf16
    acc_ref[...] += jnp.dot(scatter, msg.astype(jnp.bfloat16),
                            preferred_element_type=jnp.float32)   # [TN, Dp] f32

    # Finalize: (1+eps)*x + aggr (eps = 0), GINEConv's nn Linear, outer ReLU.
    @pl.when(k == n_k - 1)
    def _finalize():
        h = xs_ref[...] + acc_ref[...]                            # f32 self term
        out = jnp.dot(h, w_ref[...],
                      preferred_element_type=jnp.float32) + b_ref[...]
        o_ref[...] = jnp.maximum(out, 0.0)                        # lane-dense store
    # TODO(synk): F.dropout(training=True) (random mask) is not implemented;
    #             eval-mode dropout is the identity, so it is omitted here.


def gine_conv_relu(x, src, dst, edge_attr, w_edge, b_edge, w, b,
                   *, node_tile=256, edge_tile=512):
    """One GINEConv(nn=Linear) + ReLU layer via a tiled pallas_call."""
    n, d = x.shape
    e = int(src.shape[0])
    h_dim = w.shape[1]

    d_pad = _round_up(d, _LANE)
    h_pad = _round_up(h_dim, _LANE)

    # Node (output-row) tiling: single tile for small graphs, else 256-row
    # tiles (matches the 256-wide v6e/v7x MXU; harmless on v5e's 128-wide).
    if n <= node_tile:
        tn = _round_up(n, _SUBLANE)
        n_pad = tn
    else:
        tn = node_tile
        n_pad = _round_up(n, tn)

    # Edge tiling (reduction axis).  When actually tiling, TE is a multiple of
    # 128 so the (1, TE) dst block satisfies the lane constraint, and >= 256 so
    # the scatter contraction dim fills the MXU.
    if e <= edge_tile:
        te = _round_up(e, _SUBLANE)
        e_pad = te
    else:
        te = edge_tile
        e_pad = _round_up(e, te)

    n_i = n_pad // tn
    n_k = e_pad // te

    f32 = jnp.float32
    # Zero-pad features/weights.  Padded edges get src = dst = n_pad so their
    # one-hot rows/cols are all zero (no phantom messages); padded edge_attr = 0.
    xp = jnp.zeros((n_pad, d_pad), f32).at[:n, :d].set(x.astype(f32))
    srcp = jnp.full((e_pad, 1), n_pad, jnp.int32).at[:e, 0].set(src.astype(jnp.int32))
    dstp = jnp.full((1, e_pad), n_pad, jnp.int32).at[0, :e].set(dst.astype(jnp.int32))
    eap = jnp.zeros((e_pad, 1), f32).at[:e, 0].set(edge_attr.reshape(-1).astype(f32))
    wep = jnp.zeros((1, d_pad), f32).at[0, :d].set(w_edge.reshape(-1).astype(f32))
    bep = jnp.zeros((1, d_pad), f32).at[0, :d].set(b_edge.reshape(-1).astype(f32))
    wp = jnp.zeros((d_pad, h_pad), f32).at[:d, :h_dim].set(w.astype(f32))
    bp = jnp.zeros((1, h_pad), f32).at[0, :h_dim].set(b.reshape(-1).astype(f32))
    xg = xp.astype(jnp.bfloat16)      # bf16 gather source (one-hot matmul operand)

    # Advisory cost estimate (the gather matmul is repeated per node tile).
    flops = (2 * te * n_pad * d_pad * n_i * n_k      # gather one-hot matmuls
             + 2 * tn * te * d_pad * n_i * n_k       # scatter one-hot matmuls
             + 2 * n_pad * d_pad * h_pad)            # feature transform
    bytes_accessed = 4 * (xp.size + srcp.size + dstp.size + eap.size + wep.size
                          + bep.size + wp.size + bp.size + n_pad * h_pad) + 2 * xg.size
    cost = pl.CostEstimate(flops=int(flops), transcendentals=0,
                           bytes_accessed=int(bytes_accessed))

    # VMEM budget: 2x (double buffering) for the blocked inputs/output, plus
    # the f32 accumulator scratch and the bf16 one-hot intermediates; capped at
    # 48 MiB to stay inside v7x's 64 MiB physical VMEM.
    block_bytes = (n_pad * d_pad * 2          # full bf16 x (gather source)
                   + tn * d_pad * 4           # x self-term tile
                   + 3 * te * 4               # src / dst / edge_attr tiles
                   + 2 * d_pad * 4            # edge-lin weight / bias
                   + d_pad * h_pad * 4 + h_pad * 4
                   + tn * h_pad * 4)          # output tile
    scratch_bytes = tn * d_pad * 4
    onehot_bytes = 2 * (te * n_pad + tn * te)
    vmem_limit = int(min(max(2 * block_bytes + scratch_bytes + 4 * onehot_bytes
                             + (4 << 20), 32 << 20), 48 << 20))

    out_pad = pl.pallas_call(
        gine_layer_kernel,
        out_shape=jax.ShapeDtypeStruct((n_pad, h_pad), f32),
        grid_spec=pltpu.PrefetchScalarGridSpec(
            num_scalar_prefetch=0,
            grid=(n_i, n_k),
            in_specs=[
                pl.BlockSpec((n_pad, d_pad), lambda i, k: (0, 0)),  # x (bf16, gather)
                pl.BlockSpec((tn, d_pad), lambda i, k: (i, 0)),     # x (f32, self term)
                pl.BlockSpec((te, 1), lambda i, k: (k, 0)),         # src ids
                pl.BlockSpec((1, te), lambda i, k: (0, k)),         # dst ids
                pl.BlockSpec((te, 1), lambda i, k: (k, 0)),         # edge attrs
                pl.BlockSpec((1, d_pad), lambda i, k: (0, 0)),      # edge-lin W
                pl.BlockSpec((1, d_pad), lambda i, k: (0, 0)),      # edge-lin b
                pl.BlockSpec((d_pad, h_pad), lambda i, k: (0, 0)),  # nn W
                pl.BlockSpec((1, h_pad), lambda i, k: (0, 0)),      # nn b
            ],
            out_specs=pl.BlockSpec((tn, h_pad), lambda i, k: (i, 0)),
            scratch_shapes=[pltpu.VMEM((tn, d_pad), jnp.float32)],
        ),
        compiler_params=pltpu.CompilerParams(
            dimension_semantics=("parallel", "arbitrary"),
            vmem_limit_bytes=vmem_limit),
        cost_estimate=cost,
    )(xg, xp, srcp, dstp, eap, wep, bep, wp, bp)
    return out_pad[:n, :h_dim]


def gin_forward(params, x, edge_index, edge_attr, layer_num=2):
    """Mirrors GIN.forward: conv_first + relu (+ hidden GINEConv layers)."""
    src, dst = edge_index[0], edge_index[1]
    h = gine_conv_relu(x, src, dst, edge_attr,
                       params["w_edge_first"], params["b_edge_first"],
                       params["w_first"], params["b_first"])
    # TODO(synk): for layer_num > 2 the hidden layers could be fused into one
    # pallas_call (keep h resident in VMEM, reuse one-hot edge tiles) to avoid
    # an HBM round-trip + launch per layer; kept per-layer calls for clarity.
    for i in range(layer_num - 2):
        h = gine_conv_relu(h, src, dst, edge_attr,
                           params["w_edge_hidden"][i], params["b_edge_hidden"][i],
                           params["w_hidden"][i], params["b_hidden"][i])
    return h


# ----------------------------- pure-JAX reference -----------------------------

def _gine_conv_relu_ref(x, src, dst, edge_attr, w_edge, b_edge, w, b):
    edge_emb = edge_attr.reshape(-1, 1) * w_edge.reshape(1, -1) + b_edge.reshape(1, -1)
    msg = jnp.maximum(x[src] + edge_emb, 0.0)
    aggr = jnp.zeros(x.shape, x.dtype).at[dst].add(msg)
    return jnp.maximum((x + aggr) @ w + b.reshape(1, -1), 0.0)


def _gin_forward_ref(params, x, edge_index, edge_attr, layer_num=2):
    src, dst = edge_index[0], edge_index[1]
    h = _gine_conv_relu_ref(x, src, dst, edge_attr,
                            params["w_edge_first"], params["b_edge_first"],
                            params["w_first"], params["b_first"])
    for i in range(layer_num - 2):
        h = _gine_conv_relu_ref(h, src, dst, edge_attr,
                                params["w_edge_hidden"][i], params["b_edge_hidden"][i],
                                params["w_hidden"][i], params["b_hidden"][i])
    return h


if __name__ == "__main__":
    key = jax.random.PRNGKey(0)
    N, E, D_in, H = 16, 32, 8, 32          # nodes, edges, input_dim, hidden_dim
    LAYER_NUM = 2                          # module default

    keys = jax.random.split(key, 12)
    x = jax.random.normal(keys[0], (N, D_in), jnp.float32)
    src = jax.random.randint(keys[1], (E,), 0, N, dtype=jnp.int32)
    dst = jax.random.randint(keys[2], (E,), 0, N, dtype=jnp.int32)
    edge_index = jnp.stack([src, dst], axis=0)                  # [2, E]
    edge_attr = jax.random.normal(keys[3], (E,), jnp.float32)   # unsqueezed to [E,1]

    params = {
        # GINEConv's internal edge Linear(edge_dim=1 -> input_dim)
        "w_edge_first": jax.random.normal(keys[4], (1, D_in), jnp.float32) * 0.5,
        "b_edge_first": jax.random.normal(keys[5], (1, D_in), jnp.float32) * 0.1,
        # conv_first_nn = Linear(input_dim, hidden_dim)
        "w_first": jax.random.normal(keys[6], (D_in, H), jnp.float32) / jnp.sqrt(D_in),
        "b_first": jax.random.normal(keys[7], (1, H), jnp.float32) * 0.1,
        # hidden GINEConv layers: Linear(H, H) + edge Linear(1, H)
        "w_edge_hidden": [jax.random.normal(keys[8], (1, H), jnp.float32) * 0.5],
        "b_edge_hidden": [jax.random.normal(keys[9], (1, H), jnp.float32) * 0.1],
        "w_hidden": [jax.random.normal(keys[10], (H, H), jnp.float32) / jnp.sqrt(H)],
        "b_hidden": [jax.random.normal(keys[11], (1, H), jnp.float32) * 0.1],
    }

    # Default configuration (layer_num=2 -> conv_first only).
    out = jax.block_until_ready(
        gin_forward(params, x, edge_index, edge_attr, layer_num=LAYER_NUM))
    assert out.shape == (N, H) and out.dtype == jnp.float32
    ref = _gin_forward_ref(params, x, edge_index, edge_attr, layer_num=LAYER_NUM)
    tol = 5e-2 * (1.0 + float(jnp.max(jnp.abs(ref))))   # bf16 one-hot-path tolerance
    err = float(jnp.max(jnp.abs(out - ref)))
    assert err <= tol, (err, tol)

    # Also exercise the hidden-layer path (layer_num=3).
    out3 = jax.block_until_ready(
        gin_forward(params, x, edge_index, edge_attr, layer_num=3))
    ref3 = _gin_forward_ref(params, x, edge_index, edge_attr, layer_num=3)
    assert out3.shape == (N, H)
    tol3 = 5e-2 * (1.0 + float(jnp.max(jnp.abs(ref3))))
    assert float(jnp.max(jnp.abs(out3 - ref3))) <= tol3

    print("KERNEL_OK")
</pallas_src>

<mosaic_0001>
module attributes {stable_mosaic.version = 11 : i64} {
  func.func @gine_layer_kernel(%arg0: i32, %arg1: i32, %arg2: memref<16x128xbf16, #tpu.memory_space<vmem>>, %arg3: memref<16x128xf32, #tpu.memory_space<vmem>>, %arg4: memref<32x1xi32, #tpu.memory_space<vmem>>, %arg5: memref<1x32xi32, #tpu.memory_space<vmem>>, %arg6: memref<32x1xf32, #tpu.memory_space<vmem>>, %arg7: memref<1x128xf32, #tpu.memory_space<vmem>>, %arg8: memref<1x128xf32, #tpu.memory_space<vmem>>, %arg9: memref<128x128xf32, #tpu.memory_space<vmem>>, %arg10: memref<1x128xf32, #tpu.memory_space<vmem>>, %arg11: memref<16x128xf32, #tpu.memory_space<vmem>>, %arg12: memref<16x128xf32, #tpu.memory_space<vmem>>) attributes {dimension_semantics = [#tpu.dimension_semantics<parallel>, #tpu.dimension_semantics<arbitrary>], iteration_bounds = array<i64: 1, 1>, scalar_prefetch = 0 : i64, scratch_operands = 1 : i64, tpu.core_type = #tpu.core_type<tc>, window_params = [{pipeline_mode = #tpu.pipeline_mode<synchronous>, transform_indices = @transform_0, window_bounds = array<i64: 16, 128>}, {transform_indices = @transform_1, window_bounds = array<i64: 16, 128>}, {transform_indices = @transform_2, window_bounds = array<i64: 32, 1>}, {transform_indices = @transform_3, window_bounds = array<i64: 1, 32>}, {transform_indices = @transform_4, window_bounds = array<i64: 32, 1>}, {pipeline_mode = #tpu.pipeline_mode<synchronous>, transform_indices = @transform_5, window_bounds = array<i64: 1, 128>}, {pipeline_mode = #tpu.pipeline_mode<synchronous>, transform_indices = @transform_6, window_bounds = array<i64: 1, 128>}, {pipeline_mode = #tpu.pipeline_mode<synchronous>, transform_indices = @transform_7, window_bounds = array<i64: 128, 128>}, {pipeline_mode = #tpu.pipeline_mode<synchronous>, transform_indices = @transform_8, window_bounds = array<i64: 1, 128>}, {transform_indices = @transform_9, window_bounds = array<i64: 16, 128>}]} {
    %c0_i32 = arith.constant 0 : i32
    %0 = arith.cmpi eq, %arg1, %c0_i32 : i32
    %1 = arith.extui %0 : i1 to i32
    %c0_i32_0 = arith.constant 0 : i32
    %2 = arith.cmpi ne, %1, %c0_i32_0 : i32
    scf.if %2 {
      %cst_20 = arith.constant 0.000000e+00 : f32
      %41 = vector.broadcast %cst_20 : f32 to vector<16x128xf32>
      %c0_21 = arith.constant 0 : index
      %c0_22 = arith.constant 0 : index
      %42 = vector.load %arg12[%c0_21, %c0_22] : memref<16x128xf32, #tpu.memory_space<vmem>>, vector<16x128xf32>
      tpu.vector_store %arg12[%c0_21, %c0_22], %41 {strides = array<i32>} : memref<16x128xf32, #tpu.memory_space<vmem>>, vector<16x128xf32>,
    } else {
    }
    %c0 = arith.constant 0 : index
    %c0_1 = arith.constant 0 : index
    %3 = vector.load %arg6[%c0, %c0_1] : memref<32x1xf32, #tpu.memory_space<vmem>>, vector<32x1xf32>
    %c0_2 = arith.constant 0 : index
    %c0_3 = arith.constant 0 : index
    %4 = vector.load %arg7[%c0_2, %c0_3] : memref<1x128xf32, #tpu.memory_space<vmem>>, vector<1x128xf32>
    %5 = vector.broadcast %3 : vector<32x1xf32> to vector<32x128xf32>
    %6 = vector.broadcast %4 : vector<1x128xf32> to vector<32x128xf32>
    %7 = arith.mulf %5, %6 : vector<32x128xf32>
    %c0_4 = arith.constant 0 : index
    %c0_5 = arith.constant 0 : index
    %8 = vector.load %arg8[%c0_4, %c0_5] : memref<1x128xf32, #tpu.memory_space<vmem>>, vector<1x128xf32>
    %9 = vector.broadcast %8 : vector<1x128xf32> to vector<32x128xf32>
    %10 = arith.addf %7, %9 : vector<32x128xf32>
    %11 = tpu.iota {dimensions = array<i32: 1>} : vector<32x16xi32>
    %c0_6 = arith.constant 0 : index
    %c0_7 = arith.constant 0 : index
    %12 = vector.load %arg4[%c0_6, %c0_7] : memref<32x1xi32, #tpu.memory_space<vmem>>, vector<32x1xi32>
    %13 = vector.broadcast %12 : vector<32x1xi32> to vector<32x16xi32>
    %14 = arith.cmpi eq, %11, %13 : vector<32x16xi32>
    %15 = arith.extui %14 : vector<32x16xi1> to vector<32x16xi32>
    %16 = arith.sitofp %15 : vector<32x16xi32> to vector<32x16xf32>
    %17 = arith.truncf %16 : vector<32x16xf32> to vector<32x16xbf16>
    %c0_8 = arith.constant 0 : index
    %c0_9 = arith.constant 0 : index
    %18 = vector.load %arg2[%c0_8, %c0_9] : memref<16x128xbf16, #tpu.memory_space<vmem>>, vector<16x128xbf16>
    %cst = arith.constant dense<0.000000e+00> : vector<32x128xf32>
    %19 = tpu.matmul %17, %18, %cst {dimension_numbers = #tpu.dot_dimension_numbers<[1], [0], [0], [1], [0, 0, 1, 1], [], []>} : vector<32x16xbf16>, vector<16x128xbf16>, vector<32x128xf32> -> vector<32x128xf32>
    %20 = arith.addf %19, %10 : vector<32x128xf32>
    %cst_10 = arith.constant 0.000000e+00 : f32
    %21 = vector.broadcast %cst_10 : f32 to vector<32x128xf32>
    %22 = arith.maximumf %20, %21 : vector<32x128xf32>
    %23 = tpu.iota {dimensions = array<i32: 0>} : vector<16x32xi32>
    %c16_i32 = arith.constant 16 : i32
    %24 = arith.muli %arg0, %c16_i32 : i32
    %25 = vector.broadcast %24 : i32 to vector<16x32xi32>
    %26 = arith.addi %23, %25 : vector<16x32xi32>
    %c0_11 = arith.constant 0 : index
    %c0_12 = arith.constant 0 : index
    %27 = vector.load %arg5[%c0_11, %c0_12] : memref<1x32xi32, #tpu.memory_space<vmem>>, vector<1x32xi32>
    %28 = vector.broadcast %27 : vector<1x32xi32> to vector<16x32xi32>
    %29 = arith.cmpi eq, %26, %28 : vector<16x32xi32>
    %30 = arith.extui %29 : vector<16x32xi1> to vector<16x32xi32>
    %31 = arith.sitofp %30 : vector<16x32xi32> to vector<16x32xf32>
    %32 = arith.truncf %31 : vector<16x32xf32> to vector<16x32xbf16>
    %c0_13 = arith.constant 0 : index
    %c0_14 = arith.constant 0 : index
    %33 = vector.load %arg12[%c0_13, %c0_14] : memref<16x128xf32, #tpu.memory_space<vmem>>, vector<16x128xf32>
    %34 = arith.truncf %22 : vector<32x128xf32> to vector<32x128xbf16>
    %cst_15 = arith.constant dense<0.000000e+00> : vector<16x128xf32>
    %35 = tpu.matmul %32, %34, %cst_15 {dimension_numbers = #tpu.dot_dimension_numbers<[1], [0], [0], [1], [0, 0, 1, 1], [], []>} : vector<16x32xbf16>, vector<32x128xbf16>, vector<16x128xf32> -> vector<16x128xf32>
    %36 = arith.addf %33, %35 : vector<16x128xf32>
    %c0_16 = arith.constant 0 : index
    %c0_17 = arith.constant 0 : index
    %37 = vector.load %arg12[%c0_16, %c0_17] : memref<16x128xf32, #tpu.memory_space<vmem>>, vector<16x128xf32>
    tpu.vector_store %arg12[%c0_16, %c0_17], %36 {strides = array<i32>} : memref<16x128xf32, #tpu.memory_space<vmem>>, vector<16x128xf32>,
    %c0_i32_18 = arith.constant 0 : i32
    %38 = arith.cmpi eq, %arg1, %c0_i32_18 : i32
    %39 = arith.extui %38 : i1 to i32
    %c0_i32_19 = arith.constant 0 : i32
    %40 = arith.cmpi ne, %39, %c0_i32_19 : i32
    scf.if %40 {
      %c0_20 = arith.constant 0 : index
      %c0_21 = arith.constant 0 : index
      %41 = vector.load %arg3[%c0_20, %c0_21] : memref<16x128xf32, #tpu.memory_space<vmem>>, vector<16x128xf32>
      %c0_22 = arith.constant 0 : index
      %c0_23 = arith.constant 0 : index
      %42 = vector.load %arg12[%c0_22, %c0_23] : memref<16x128xf32, #tpu.memory_space<vmem>>, vector<16x128xf32>
      %43 = arith.addf %41, %42 : vector<16x128xf32>
      %c0_24 = arith.constant 0 : index
      %c0_25 = arith.constant 0 : index
      %44 = vector.load %arg9[%c0_24, %c0_25] : memref<128x128xf32, #tpu.memory_space<vmem>>, vector<128x128xf32>
      %cst_26 = arith.constant dense<0.000000e+00> : vector<16x128xf32>
      %45 = tpu.matmul %43, %44, %cst_26 {dimension_numbers = #tpu.dot_dimension_numbers<[1], [0], [0], [1], [0, 0, 1, 1], [], []>} : vector<16x128xf32>, vector<128x128xf32>, vector<16x128xf32> -> vector<16x128xf32>
      %c0_27 = arith.constant 0 : index
      %c0_28 = arith.constant 0 : index
      %46 = vector.load %arg10[%c0_27, %c0_28] : memref<1x128xf32, #tpu.memory_space<vmem>>, vector<1x128xf32>
      %47 = vector.broadcast %46 : vector<1x128xf32> to vector<16x128xf32>
      %48 = arith.addf %45, %47 : vector<16x128xf32>
      %cst_29 = arith.constant 0.000000e+00 : f32
      %49 = vector.broadcast %cst_29 : f32 to vector<16x128xf32>
      %50 = arith.maximumf %48, %49 : vector<16x128xf32>
      %c0_30 = arith.constant 0 : index
      %c0_31 = arith.constant 0 : index
      %51 = vector.load %arg11[%c0_30, %c0_31] : memref<16x128xf32, #tpu.memory_space<vmem>>, vector<16x128xf32>
      tpu.vector_store %arg11[%c0_30, %c0_31], %50 {strides = array<i32>} : memref<16x128xf32, #tpu.memory_space<vmem>>, vector<16x128xf32>,
    } else {
    }
    return
  }
  func.func @transform_0(%arg0: i32, %arg1: i32) -> (i32, i32) {
    %c0_i32 = arith.constant 0 : i32
    %c0_i32_0 = arith.constant 0 : i32
    %c0_i32_1 = arith.constant 0 : i32
    return %c0_i32, %c0_i32_0 : i32, i32
  }
  func.func @transform_1(%arg0: i32, %arg1: i32) -> (i32, i32) {
    %c0_i32 = arith.constant 0 : i32
    %c0_i32_0 = arith.constant 0 : i32
    return %arg0, %c0_i32 : i32, i32
  }
  func.func @transform_2(%arg0: i32, %arg1: i32) -> (i32, i32) {
    %c0_i32 = arith.constant 0 : i32
    %c0_i32_0 = arith.constant 0 : i32
    return %arg1, %c0_i32 : i32, i32
  }
  func.func @transform_3(%arg0: i32, %arg1: i32) -> (i32, i32) {
    %c0_i32 = arith.constant 0 : i32
    %c0_i32_0 = arith.constant 0 : i32
    return %c0_i32, %arg1 : i32, i32
  }
  func.func @transform_4(%arg0: i32, %arg1: i32) -> (i32, i32) {
    %c0_i32 = arith.constant 0 : i32
    %c0_i32_0 = arith.constant 0 : i32
    return %arg1, %c0_i32 : i32, i32
  }
  func.func @transform_5(%arg0: i32, %arg1: i32) -> (i32, i32) {
    %c0_i32 = arith.constant 0 : i32
    %c0_i32_0 = arith.constant 0 : i32
    %c0_i32_1 = arith.constant 0 : i32
    return %c0_i32, %c0_i32_0 : i32, i32
  }
  func.func @transform_6(%arg0: i32, %arg1: i32) -> (i32, i32) {
    %c0_i32 = arith.constant 0 : i32
    %c0_i32_0 = arith.constant 0 : i32
    %c0_i32_1 = arith.constant 0 : i32
    return %c0_i32, %c0_i32_0 : i32, i32
  }
  func.func @transform_7(%arg0: i32, %arg1: i32) -> (i32, i32) {
    %c0_i32 = arith.constant 0 : i32
    %c0_i32_0 = arith.constant 0 : i32
    %c0_i32_1 = arith.constant 0 : i32
    return %c0_i32, %c0_i32_0 : i32, i32
  }
  func.func @transform_8(%arg0: i32, %arg1: i32) -> (i32, i32) {
    %c0_i32 = arith.constant 0 : i32
    %c0_i32_0 = arith.constant 0 : i32
    %c0_i32_1 = arith.constant 0 : i32
    return %c0_i32, %c0_i32_0 : i32, i32
  }
  func.func @transform_9(%arg0: i32, %arg1: i32) -> (i32, i32) {
    %c0_i32 = arith.constant 0 : i32
    %c0_i32_0 = arith.constant 0 : i32
    return %arg0, %c0_i32 : i32, i32
  }
}

</mosaic_0001>

<bundles_post_ra>
// kernel: tpu_custom_call.1
= control target key start
LH: loop header
LB: loop body
LE: loop exit
PB: predicated region body
PF: predicated region fallthrough
CT: control target
= control target key end

     0   :  { %14 = vsyncpa [#allocation4], 0  ;;  %s497_s0 = inlined_call_operand.vmem [shape: bf16[16,128], index: 0, kind: input, shape index: {}]   ;;  %s498_s1 = inlined_call_operand.vmem [shape: f32[16,128], index: 1, kind: input, shape index: {}]   ;;  %s499_s2 = inlined_call_operand.vmem [shape: s32[32,1], index: 2, kind: input, shape index: {}]   ;;  %s500_s3 = inlined_call_operand.vmem [shape: s32[1,32], index: 3, kind: input, shape index: {}]   ;;  %s501_s4 = inlined_call_operand.vmem [shape: f32[32,1], index: 4, kind: input, shape index: {}]   ;;  %s502_s5 = inlined_call_operand.vmem [shape: f32[1,128], index: 5, kind: input, shape index: {}]   ;;  %s503_s6 = inlined_call_operand.vmem [shape: f32[1,128], index: 6, kind: input, shape index: {}]   ;;  %s504_s7 = inlined_call_operand.hbm [shape: f32[128,128], index: 7, kind: input, shape index: {}]   ;;  %s505_s8 = inlined_call_operand.vmem [shape: f32[1,128], index: 8, kind: input, shape index: {}]   ;;  %s506_s9 = inlined_call_operand.hbm [shape: f32[16,128], index: 9, kind: output, shape index: {}]  }
   0x1   :  { %15 = vsyncpa [#allocation5], 0  ;;  %s34_s11 = sshll.u32 %s504_s7, 4  ;;  %s378_s12 = smov [#allocation3]   ;;  %s35_s11 = int_to_ptr.hbm [resolvable:$true] %s34_s11 }
   0x2   :  { %s36_s13 = sshll.u32 %s378_s12, 4  ;;  %s379_s14 = smov 128   ;;  %s37_s13 = int_to_ptr.vmem [resolvable:$true] %s36_s13 }
   0x3   :  { %s380_s15 = smov 8  }
   0x4   :  { %42 = dma.hbm_to_vmem [thread:$0]  %s35_s11, 2048, %s37_s13, [#allocation4], %s379_s14, %s379_s14, %s380_s15  }
   0x5   :  { %374 = dma.done.wait [#allocation4], 2048  }
   0x6   :  { %375 = vsyncadd [#allocation4], 4294965248  ;;  %v381_v0 = vmov 0   ;;  %v100_v1 = vld [vmem:[%s499_s2 + $0x10] sm:$0xff]  ;;  %v98_v2 = vld [vmem:[%s499_s2] sm:$0xff]  ;;  %v96_v9 = vlaneseq  ;;  %v382_v15 = vmov 0.0  }
   0x7   :  { %320 = vset.pattern.permute.xlu1 %v381_v0  ;;  %319 = vset.pattern.permute.xlu0 %v381_v0  ;;  %v101_v3 = vld [vmem:[%s499_s2 + $0x18] sm:$0xff]  ;;  %v99_v4 = vld [vmem:[%s499_s2 + $0x8] sm:$0xff]  ;;  %v56_v6 = vld [vmem:[%s501_s4] sm:$0xff]  ;;  %vm136_vm2 = vcmask 130048   ;;  %vm186_vm7 = vcmask 261120   ;;  %s383_s19 = smov [#allocation6]  }
   0x8   :  { %321 = vset.pattern.permute.xlu2 %v381_v0  ;;  %109 = vperm.xlu1 %320, %v100_v1   ;;  %v57_v5 = vld [vmem:[%s501_s4 + $0x8] sm:$0xff]  ;;  %v296_v7 = vld [vmem:[%s497_s0] sm:$0xff]  ;;  %v58_v8 = vld [vmem:[%s501_s4 + $0x10] sm:$0xff]  ;;  %v97_v11 = vand.u32 127, %v96_v9  ;;  %v167_v44 = vshrl.u32 %v96_v9, 7  ;;  %s268_s20 = sshll.u32 %s383_s19, 4  ;;  %s269_s20 = int_to_ptr.vmem [resolvable:$true] %s268_s20 }
   0x9   :  { %103 = vperm.xlu0 %319, %v98_v2   ;;  %150 = vmatpush.bf16.msra.mxu0 %v296_v7  ;;  %v59_v12 = vld [vmem:[%s501_s4 + $0x18] sm:$0xff]  ;;  %v231_v26 = vld [vmem:[#allocation3 + $0x70] sm:$0xff]  ;;  %v230_v28 = vld [vmem:[#allocation3 + $0x68] sm:$0xff]  ;;  %s270_s23 = sshll.u32 %s506_s9, 4  ;;  %s271_s23 = int_to_ptr.hbm [resolvable:$true] %s270_s23 }
   0xa   :  { %73 = vperm.xlu2 %321, %v58_v8   ;;  %v232_v25 = vld [vmem:[#allocation3 + $0x78] sm:$0xff]  ;;  %v229_v29 = vld [vmem:[#allocation3 + $0x60] sm:$0xff]  ;;  %v227_v32 = vld [vmem:[#allocation3 + $0x50] sm:$0xff]  ;;  %v168_v52 = vadd.s32 8, %v167_v44 }
   0xb   :  { %237 = vmatpush.msra.mxu2 %v232_v25  ;;  %297 = vmatpush.msra.mxu3 %v232_v25  ;;  %v228_v30 = vld [vmem:[#allocation3 + $0x58] sm:$0xff]  ;;  %v322_v31 = vld [vmem:[%s502_s5] ss:$0 sm:$0xff]  ;;  %v226_v37 = vld [vmem:[#allocation3 + $0x48] sm:$0xff] }
   0xc   :  { %v323_v38 = vld [vmem:[%s503_s6] ss:$0 sm:$0xff]  ;;  %v224_v45 = vld [vmem:[#allocation3 + $0x38] sm:$0xff]  ;;  %v223_v47 = vld [vmem:[#allocation3 + $0x30] sm:$0xff] }
   0xd   :  { %238 = vmatpush.msra.mxu2 %v231_v26  ;;  %298 = vmatpush.msra.mxu3 %v231_v26  ;;  %v225_v40 = vld [vmem:[#allocation3 + $0x40] sm:$0xff]  ;;  %v222_v54 = vld [vmem:[#allocation3 + $0x28] sm:$0xff]  ;;  %v220_v62 = vld [vmem:[#allocation3 + $0x18] sm:$0xff] }
   0xe   :  { %v324_v53 = vld [vmem:[%s500_s3] ss:$0 sm:$0xff]  ;;  %v219_v1 = vld [vmem:[#allocation3 + $0x10] sm:$0xff]  ;;  %v218_v7 = vld [vmem:[#allocation3 + $0x8] sm:$0xff] }
   0xf   :  { %239 = vmatpush.msra.mxu2 %v230_v28  ;;  %299 = vmatpush.msra.mxu3 %v230_v28  ;;  %v221_v58 = vld [vmem:[#allocation3 + $0x20] sm:$0xff]  ;;  %vm175_vm5 = vcmp.eq.s32.totalorder %v167_v44, %v324_v53  ;;  %vm176_vm6 = vcmp.eq.s32.totalorder %v168_v52, %v324_v53 }
  0x10   :  { %112 = vperm.xlu1 %320, %v101_v3   ;;  %v293_v3 = vsel %vm175_vm5, 1.0, %v382_v15  ;;  %v217_v8 = vld [vmem:[#allocation3] sm:$0xff] }
  0x11   :  { %106 = vperm.xlu0 %319, %v99_v4   ;;  %240 = vmatpush.msra.mxu2 %v229_v29  ;;  %v294_v4 = vsel %vm176_vm6, 1.0, %v382_v15  ;;  %v211_v9 = vld [vmem:[%s498_s1] sm:$0xff] }
  0x12   :  { %78 = vperm.xlu2 %321, %v59_v12   ;;  %300 = vmatpush.msra.mxu3 %v229_v29  ;;  %v212_v12 = vld [vmem:[%s498_s1 + $0x8] sm:$0xff] }
  0x13   :  { %241 = vmatpush.msra.mxu2 %v228_v30 }
  0x14   :  { %301 = vmatpush.msra.mxu3 %v228_v30 }
  0x15   :  { %242 = vmatpush.msra.mxu2 %v227_v32 }
  0x16   :  { %302 = vmatpush.msra.mxu3 %v227_v32 }
  0x17   :  { %243 = vmatpush.msra.mxu2 %v226_v37 }
  0x18   :  { %68 = vperm.xlu1 %320, %v57_v5   ;;  %303 = vmatpush.msra.mxu3 %v226_v37 }
  0x19   :  { %63 = vperm.xlu0 %319, %v56_v6   ;;  %244 = vmatpush.msra.mxu2 %v225_v40  ;;  %v181_v6 = vpack.c.bf16 %v294_v4, %v293_v3 }
  0x1a   :  { %304 = vmatpush.msra.mxu3 %v225_v40 }
  0x1b   :  { %245 = vmatpush.msra.mxu2 %v224_v45 }
  0x1c   :  { %305 = vmatpush.msra.mxu3 %v224_v45 }
  0x1d   :  { %246 = vmatpush.msra.mxu2 %v223_v47 }
  0x1e   :  { %306 = vmatpush.msra.mxu3 %v223_v47 }
  0x1f   :  { %247 = vmatpush.msra.mxu2 %v222_v54 }
  0x20   :  { %307 = vmatpush.msra.mxu3 %v222_v54 }
  0x21   :  { %248 = vmatpush.msra.mxu2 %v221_v58 }
  0x22   :  { %308 = vmatpush.msra.mxu3 %v221_v58 }
  0x23   :  { %249 = vmatpush.msra.mxu2 %v220_v62 }
  0x24   :  { %309 = vmatpush.msra.mxu3 %v220_v62 }
  0x25   :  { %250 = vmatpush.msra.mxu2 %v219_v1 }
  0x26   :  { %310 = vmatpush.msra.mxu3 %v219_v1 }
  0x27   :  { %251 = vmatpush.msra.mxu2 %v218_v7 }
  0x28   :  { %311 = vmatpush.msra.mxu3 %v218_v7 }
  0x29   :  { %252 = vmatpush.msra.mxu2 %v217_v8 }
  0x2a   :  { %312 = vmatpush.msra.mxu3 %v217_v8 }
  0x64   :  { %v74_v24 = vpop.permute.xlu2 %73 }
  0x65   :  { %v86_v34 = vmul.f32 %v322_v31, %v74_v24 }
  0x67   :  { %v94_v43 = vadd.f32 %v323_v38, %v86_v34 }
  0x6c   :  { %v79_v35 = vpop.permute.xlu2 %78 }
  0x6d   :  { %v87_v42 = vmul.f32 %v322_v31, %v79_v35 }
  0x6f   :  { %v95_v50 = vadd.f32 %v323_v38, %v87_v42 }
  0x7a   :  { %v110_v14 = vpop.permute.xlu1 %109 }
  0x7b   :  { %v104_v10 = vpop.permute.xlu0 %103  ;;  %vm116_vm3 = vcmp.eq.s32.totalorder %v97_v11, %v110_v14 }
  0x7c   :  { %vm114_vm0 = vcmp.eq.s32.totalorder %v97_v11, %v104_v10  ;;  %v285_v20 = vsel %vm116_vm3, 1.0, %v382_v15 }
  0x7d   :  { %v283_v16 = vsel %vm114_vm0, 1.0, %v382_v15 }
  0x82   :  { %v113_v19 = vpop.permute.xlu1 %112 }
  0x83   :  { %v107_v13 = vpop.permute.xlu0 %106  ;;  %vm117_vm4 = vcmp.eq.s32.totalorder %v97_v11, %v113_v19 }
  0x84   :  { %vm115_vm1 = vcmp.eq.s32.totalorder %v97_v11, %v107_v13  ;;  %v286_v21 = vsel %vm117_vm4, 1.0, %v382_v15 }
  0x85   :  { %v284_v17 = vsel %vm115_vm1, 1.0, %v382_v15  ;;  %v127_v22 = vpack.c.bf16 %v286_v21, %v285_v20  ;;  %v325_v15 = vld [vmem:[%s505_s8] ss:$0 sm:$0xff] }
  0x86   :  { %v126_v18 = vpack.c.bf16 %v284_v17, %v283_v16 }
  0x88   :  { %291 = vmatmul.msk.bf16.vlgmr.msra.gmra.mxu0 %vm136_vm2, %v126_v18 }
  0x8a   :  { %v69_v33 = vpop.permute.xlu1 %68 }
  0x8b   :  { %v64_v39 = vpop.permute.xlu0 %63  ;;  %v85_v41 = vmul.f32 %v322_v31, %v69_v33 }
  0x8c   :  { %v84_v46 = vmul.f32 %v322_v31, %v64_v39 }
  0x8d   :  { %v93_v48 = vadd.f32 %v323_v38, %v85_v41 }
  0x8e   :  { %v92_v55 = vadd.f32 %v323_v38, %v84_v46 }
  0x98   :  { %292 = vmatmul.msk.bf16.gmra.mxu0 %vm136_vm2, %v127_v22 }
 0x105   :  { %v152_v23 = vpop.f32.mrf.mxu0 }
 0x106   :  { %v153_v59 = vadd.f32 %v152_v23, %v92_v55 }
 0x108   :  { %v162_v2 = vmax.f32 %v153_v59, 0.0 }
 0x10d   :  { %v154_v27 = vpop.f32.mrf.mxu0 }
 0x10e   :  { %v155_v56 = vadd.f32 %v154_v27, %v93_v48 }
 0x110   :  { %v163_v63 = vmax.f32 %v155_v56, 0.0 }
 0x112   :  { %v184_v5 = vpack.c.bf16 %v163_v63, %v162_v2 }
 0x115   :  { %v157_v36 = vpop.f32.mrf.mxu0 }
 0x116   :  { %v158_v49 = vadd.f32 %v157_v36, %v94_v43 }
 0x118   :  { %v164_v60 = vmax.f32 %v158_v49, 0.0 }
 0x11d   :  { %v159_v51 = vpop.f32.mrf.mxu0 }
 0x11e   :  { %v160_v57 = vadd.f32 %v159_v51, %v95_v50 }
 0x120   :  { %v165_v61 = vmax.f32 %v160_v57, 0.0 }
 0x122   :  { %v185_v0 = vpack.c.bf16 %v165_v61, %v164_v60 }
 0x124   :  { %196 = vmatpush.bf16.msra.mxu1 %v185_v0 }
 0x128   :  { %197 = vmatpush.bf16.msra.mxu1 %v184_v5 }
 0x12b   :  { %295 = vmatmul.msk.bf16.vlgmr.msra.gmra.mxu1 %vm186_vm7, %v181_v6 }
 0x1a8   :  { %v199_v10 = vpop.f32.mrf.mxu1 }
 0x1a9   :  { %v215_v11 = vadd.f32 %v211_v9, %v199_v10 }
 0x1ab   :  { %253 = vmatmul.f32.vlgmr.msra.gmra.mxu2 %v215_v11 }
 0x1b0   :  { %v201_v13 = vpop.f32.mrf.mxu1 }
 0x1b1   :  { %v216_v14 = vadd.f32 %v212_v12, %v201_v13 }
 0x1b3   :  { %256 = vmatmul.f32.vlgmr.msra.gmra.mxu3 %v216_v14 }
 0x22e   :  { %v254_v16 = vpop.f32.mrf.mxu2 }
 0x22f   :  { %v255_v17 = vadd.f32 %v325_v15, %v254_v16 }
 0x231   :  { %v260_v18 = vmax.f32 %v255_v17, 0.0 }
 0x233   :  { %262 = vst [vmem:[#allocation6] sm:$0xff] %v260_v18 }
 0x236   :  { %v257_v19 = vpop.f32.mrf.mxu3 }
 0x237   :  { %v258_v20 = vadd.f32 %v325_v15, %v257_v19 }
 0x239   :  { %v261_v21 = vmax.f32 %v258_v20, 0.0 }
 0x23b   :  { %263 = vst [vmem:[#allocation6 + $0x8] sm:$0xff] %v261_v21 }
 0x23c   :  { %276 = dma.vmem_to_hbm [thread:$0]  %s269_s20, 256, %s271_s23, [#allocation5], %s379_s14, %s379_s14, %s380_s15  }
 0x23d   :  { %376 = dma.done.wait [#allocation5], 256  }
 0x23e   :  { %377 = vsyncadd [#allocation5], 4294967040 }
 0x23f   :  { %281 = vsyncpa [#allocation4], 1 }
 0x240   :  { %282 = vsyncpa [#allocation5], 1 }

</bundles_post_ra>
